<compile_context>
chip_gen: v7x
topology: tpu7x:2x2x1
jax: 0.10.0
libtpu: 0.0.40
codegen_flags: <defaults>
</compile_context>

<pallas_src>
import functools

import jax
import jax.numpy as jnp
from jax import lax
from jax.experimental import pallas as pl
from jax.experimental.pallas import tpu as pltpu


# --------------------------------------------------------------------------- #
# Kernel                                                                      #
# --------------------------------------------------------------------------- #
def _gated_pool_kernel(mask_ref, win_ref, out_ref, *, kk: int):
    """mask_ref: SMEM (kk,) f32 (scalar-prefetched mask weights)
       win_ref : VMEM (kk, TR, TL) in x.dtype  -- the kk window taps of this tile
       out_ref : VMEM (TR, TL) in x.dtype
    """
    w0 = win_ref[0].astype(jnp.float32)
    gate = mask_ref[0] * w0            # conv2d(x_c, mask) == sum_i mask_i * tap_i
    mx = w0                            # running max  (max_pool2d)
    sm = w0                            # running sum  (avg_pool2d numerator)
    for i in range(1, kk):             # kk = kernel_size**2 is small -> unrolled
        wi = win_ref[i].astype(jnp.float32)
        gate = gate + mask_ref[i] * wi
        mx = jnp.maximum(mx, wi)
        sm = sm + wi
    alpha = jax.nn.sigmoid(gate)       # EUP slot (free next to the VPU work)
    avg = sm * (1.0 / kk)
    # alpha*mx + (1-alpha)*avg  ==  avg + alpha*(mx - avg)   (one fewer multiply)
    out_ref[...] = (avg + alpha * (mx - avg)).astype(out_ref.dtype)


# --------------------------------------------------------------------------- #
# Tiling heuristics                                                           #
# --------------------------------------------------------------------------- #
def _choose_tiles(total: int, kk: int, itemsize: int):
    """Pick (LANE, TR, rows_padded) for the lane-dense (rows, LANE) layout."""
    lane = 1024
    while lane > 128 and total < lane:          # keep padding small on tiny inputs
        lane //= 2

    sub_min = 8 if itemsize >= 4 else (16 if itemsize == 2 else 32)

    # double-buffered per-tile bytes: 2 * (kk inputs + 1 output) * TR * LANE * itemsize
    budget = 10 * 1024 * 1024                   # fits v5e's 16 MiB scoped-VMEM default
    tr = budget // (2 * (kk + 1) * lane * itemsize)
    tr = max(sub_min, min(256, (tr // sub_min) * sub_min))

    rows = -(-total // lane)
    tr = min(tr, -(-rows // sub_min) * sub_min)  # never a tile taller than the data
    rows_padded = -(-rows // tr) * tr
    return lane, tr, rows_padded


# --------------------------------------------------------------------------- #
# Wrapper                                                                     #
# --------------------------------------------------------------------------- #
def gated_pool_l(x, mask, *, kernel_size: int, stride: int, padding: int = 0,
                 dilation: int = 1):
    """x: (B, C, H, W), mask: (1, 1, k, k) f32.  Returns (B, C, Ho, Wo) in x.dtype."""
    assert padding == 0, "only padding=0 is supported (see TODO above)"
    assert dilation == 1, "only dilation=1 is supported"
    B, C, H, W = x.shape
    k, s = kernel_size, stride
    kk = k * k
    Ho = (H - k) // s + 1
    Wo = (W - k) // s + 1
    total = B * C * Ho * Wo

    # ---- build window taps: (kk, total) ------------------------------------
    if s == k and H % k == 0 and W % k == 0:
        # non-overlapping pooling: a pure reshape + transpose (no traffic blowup)
        xr = x.reshape(B, C, Ho, k, Wo, k)
        windows = jnp.transpose(xr, (3, 5, 0, 1, 2, 4)).reshape(kk, total)
    else:
        # general case: k*k strided slices (tap order ki*k + kj, matches mask flatten)
        taps = []
        for ki in range(k):
            for kj in range(k):
                taps.append(x[:, :, ki:ki + s * Ho:s, kj:kj + s * Wo:s])
        windows = jnp.stack(taps, axis=0).reshape(kk, total)

    # ---- lane-dense re-layout + tiling --------------------------------------
    itemsize = jnp.dtype(x.dtype).itemsize
    LANE, TR, rows_padded = _choose_tiles(total, kk, itemsize)
    padded_total = rows_padded * LANE
    if padded_total != total:
        windows = jnp.pad(windows, ((0, 0), (0, padded_total - total)))
    windows = windows.reshape(kk, rows_padded, LANE)
    mask_flat = mask.reshape(-1).astype(jnp.float32)          # (kk,) -> SMEM

    grid = (rows_padded // TR,)
    out = pl.pallas_call(
        functools.partial(_gated_pool_kernel, kk=kk),
        out_shape=jax.ShapeDtypeStruct((rows_padded, LANE), x.dtype),
        grid_spec=pltpu.PrefetchScalarGridSpec(
            num_scalar_prefetch=1,                             # mask -> SMEM
            grid=grid,
            in_specs=[pl.BlockSpec((kk, TR, LANE), lambda i, mask_ref: (0, i, 0))],
            out_specs=pl.BlockSpec((TR, LANE), lambda i, mask_ref: (i, 0)),
        ),
        compiler_params=pltpu.CompilerParams(
            dimension_semantics=("parallel",)),                # megacore on v7x
    )(mask_flat, windows)

    return out.reshape(-1)[:total].reshape(B, C, Ho, Wo)


# --------------------------------------------------------------------------- #
# Pure-JAX reference (matches the PyTorch forward for padding=0, dilation=1)  #
# --------------------------------------------------------------------------- #
def _reference(x, mask, *, kernel_size: int, stride: int):
    B, C, H, W = x.shape
    k, s = kernel_size, stride
    Ho = (H - k) // s + 1
    Wo = (W - k) // s + 1
    gate = lax.conv_general_dilated(
        x.reshape(B * C, 1, H, W).astype(jnp.float32), mask,
        window_strides=(s, s), padding="VALID",
        dimension_numbers=("NCHW", "OIHW", "NCHW"),
    ).reshape(B, C, Ho, Wo)
    alpha = jax.nn.sigmoid(gate)
    xf = x.astype(jnp.float32)
    mx = lax.reduce_window(xf, -jnp.inf, lax.max, (1, 1, k, k), (1, 1, s, s), "VALID")
    av = lax.reduce_window(xf, 0.0, lax.add, (1, 1, k, k), (1, 1, s, s), "VALID") / (k * k)
    return alpha * mx + (1.0 - alpha) * av


if __name__ == "__main__":
    kernel_size, stride, padding = 2, 2, 0
    B, C, H, W = 2, 4, 16, 16

    key = jax.random.PRNGKey(0)
    kx, km = jax.random.split(key)
    x = jax.random.normal(kx, (B, C, H, W), dtype=jnp.float32)
    # nn.Parameter(torch.rand(1, 1, k, k)) -> uniform [0, 1)
    mask = jax.random.uniform(km, (1, 1, kernel_size, kernel_size), dtype=jnp.float32)

    # f32, non-overlapping (fast reshape/transpose window path)
    out = gated_pool_l(x, mask, kernel_size=kernel_size, stride=stride,
                       padding=padding)
    out = jax.block_until_ready(out)
    ref = _reference(x, mask, kernel_size=kernel_size, stride=stride)
    assert out.shape == (B, C, H // 2, W // 2)
    assert jnp.allclose(out, ref, atol=1e-5, rtol=1e-5)

    # bf16 path (f32 accumulation in-kernel, bf16 store)
    out_bf = jax.block_until_ready(
        gated_pool_l(x.astype(jnp.bfloat16), mask, kernel_size=kernel_size,
                     stride=stride, padding=padding))
    assert out_bf.dtype == jnp.bfloat16
    assert jnp.allclose(out_bf.astype(jnp.float32), ref, atol=1e-1, rtol=1e-1)

    # overlapping windows (general strided-slice window path): k=3, stride=1
    mask3 = jax.random.uniform(km, (1, 1, 3, 3), dtype=jnp.float32)
    out3 = jax.block_until_ready(
        gated_pool_l(x, mask3, kernel_size=3, stride=1, padding=0))
    ref3 = _reference(x, mask3, kernel_size=3, stride=1)
    assert jnp.allclose(out3, ref3, atol=1e-5, rtol=1e-5)

    print("KERNEL_OK")
</pallas_src>

<mosaic_0001>
module attributes {stable_mosaic.version = 11 : i64} {
  func.func @_gated_pool_kernel(%arg0: i32, %arg1: memref<4xf32, #tpu.memory_space<smem>>, %arg2: memref<4x8x512xf32, #tpu.memory_space<vmem>>, %arg3: memref<8x512xf32, #tpu.memory_space<vmem>>) attributes {dimension_semantics = [#tpu.dimension_semantics<parallel>], iteration_bounds = array<i64: 1>, scalar_prefetch = 1 : i64, scratch_operands = 0 : i64, tpu.core_type = #tpu.core_type<tc>, window_params = [{transform_indices = @transform_0, window_bounds = array<i64: 4, 8, 512>}, {transform_indices = @transform_1, window_bounds = array<i64: 8, 512>}]} {
    %c0 = arith.constant 0 : index
    %c0_0 = arith.constant 0 : index
    %c0_1 = arith.constant 0 : index
    %0 = vector.load %arg2[%c0, %c0_0, %c0_1] : memref<4x8x512xf32, #tpu.memory_space<vmem>>, vector<1x8x512xf32>
    %1 = vector.shape_cast %0 : vector<1x8x512xf32> to vector<8x512xf32>
    %c0_2 = arith.constant 0 : index
    %2 = memref.load %arg1[%c0_2] : memref<4xf32, #tpu.memory_space<smem>>
    %3 = vector.broadcast %2 : f32 to vector<8x512xf32>
    %4 = arith.mulf %3, %1 : vector<8x512xf32>
    %c1 = arith.constant 1 : index
    %c0_3 = arith.constant 0 : index
    %c0_4 = arith.constant 0 : index
    %5 = vector.load %arg2[%c1, %c0_3, %c0_4] : memref<4x8x512xf32, #tpu.memory_space<vmem>>, vector<1x8x512xf32>
    %6 = vector.shape_cast %5 : vector<1x8x512xf32> to vector<8x512xf32>
    %c1_5 = arith.constant 1 : index
    %7 = memref.load %arg1[%c1_5] : memref<4xf32, #tpu.memory_space<smem>>
    %8 = vector.broadcast %7 : f32 to vector<8x512xf32>
    %9 = arith.mulf %8, %6 : vector<8x512xf32>
    %10 = arith.addf %4, %9 : vector<8x512xf32>
    %11 = arith.maximumf %1, %6 : vector<8x512xf32>
    %12 = arith.addf %1, %6 : vector<8x512xf32>
    %c2 = arith.constant 2 : index
    %c0_6 = arith.constant 0 : index
    %c0_7 = arith.constant 0 : index
    %13 = vector.load %arg2[%c2, %c0_6, %c0_7] : memref<4x8x512xf32, #tpu.memory_space<vmem>>, vector<1x8x512xf32>
    %14 = vector.shape_cast %13 : vector<1x8x512xf32> to vector<8x512xf32>
    %c2_8 = arith.constant 2 : index
    %15 = memref.load %arg1[%c2_8] : memref<4xf32, #tpu.memory_space<smem>>
    %16 = vector.broadcast %15 : f32 to vector<8x512xf32>
    %17 = arith.mulf %16, %14 : vector<8x512xf32>
    %18 = arith.addf %10, %17 : vector<8x512xf32>
    %19 = arith.maximumf %11, %14 : vector<8x512xf32>
    %20 = arith.addf %12, %14 : vector<8x512xf32>
    %c3 = arith.constant 3 : index
    %c0_9 = arith.constant 0 : index
    %c0_10 = arith.constant 0 : index
    %21 = vector.load %arg2[%c3, %c0_9, %c0_10] : memref<4x8x512xf32, #tpu.memory_space<vmem>>, vector<1x8x512xf32>
    %22 = vector.shape_cast %21 : vector<1x8x512xf32> to vector<8x512xf32>
    %c3_11 = arith.constant 3 : index
    %23 = memref.load %arg1[%c3_11] : memref<4xf32, #tpu.memory_space<smem>>
    %24 = vector.broadcast %23 : f32 to vector<8x512xf32>
    %25 = arith.mulf %24, %22 : vector<8x512xf32>
    %26 = arith.addf %18, %25 : vector<8x512xf32>
    %27 = arith.maximumf %19, %22 : vector<8x512xf32>
    %28 = arith.addf %20, %22 : vector<8x512xf32>
    %29 = arith.negf %26 : vector<8x512xf32>
    %30 = math.exp %29 : vector<8x512xf32>
    %cst = arith.constant 1.000000e+00 : f32
    %31 = vector.broadcast %cst : f32 to vector<8x512xf32>
    %32 = arith.addf %31, %30 : vector<8x512xf32>
    %33 = arith.divf %31, %32 : vector<8x512xf32>
    %cst_12 = arith.constant 2.500000e-01 : f32
    %34 = vector.broadcast %cst_12 : f32 to vector<8x512xf32>
    %35 = arith.mulf %28, %34 : vector<8x512xf32>
    %36 = arith.subf %27, %35 : vector<8x512xf32>
    %37 = arith.mulf %33, %36 : vector<8x512xf32>
    %38 = arith.addf %35, %37 : vector<8x512xf32>
    %c0_13 = arith.constant 0 : index
    %c0_14 = arith.constant 0 : index
    %39 = vector.load %arg3[%c0_13, %c0_14] : memref<8x512xf32, #tpu.memory_space<vmem>>, vector<8x512xf32>
    tpu.vector_store %arg3[%c0_13, %c0_14], %38 {strides = array<i32>} : memref<8x512xf32, #tpu.memory_space<vmem>>, vector<8x512xf32>,
    return
  }
  func.func @transform_0(%arg0: i32, %arg1: memref<4xf32, #tpu.memory_space<smem>>) -> (i32, i32, i32) {
    %c0_i32 = arith.constant 0 : i32
    %c0_i32_0 = arith.constant 0 : i32
    %c0_i32_1 = arith.constant 0 : i32
    return %c0_i32, %arg0, %c0_i32_0 : i32, i32, i32
  }
  func.func @transform_1(%arg0: i32, %arg1: memref<4xf32, #tpu.memory_space<smem>>) -> (i32, i32) {
    %c0_i32 = arith.constant 0 : i32
    %c0_i32_0 = arith.constant 0 : i32
    return %arg0, %c0_i32 : i32, i32
  }
}

</mosaic_0001>

<bundles_post_ra>
// kernel: tpu_custom_call.1
= control target key start
LH: loop header
LB: loop body
LE: loop exit
PB: predicated region body
PF: predicated region fallthrough
CT: control target
= control target key end

     0   :  { %s355_s0 = inlined_call_operand.hbm [shape: f32[4], index: 0, kind: input, shape index: {}]   ;;  %s356_s1 = inlined_call_operand.hbm [shape: f32[4,8,512], index: 1, kind: input, shape index: {}]   ;;  %s357_s2 = inlined_call_operand.hbm [shape: f32[8,512], index: 2, kind: output, shape index: {}]  }
   0x1   :  { %s194_s11 = scalar_lea.hbm %s355_s0, 16 }
   0x2   :  { %p195_p0 = scmp.ne.s32.totalorder %s355_s0, %s194_s11  ;;  %p198_p1 = scmp.lt.u32.totalorder %s194_s11, %s355_s0 }
   0x4   :  { %p200_p2 = pnand %p198_p1, %p195_p0 }
   0x6   :  { %203 = shalt.err (!%p200_p2)  }
   0x7   :  { %s254_s16 = smov [#allocation3]  }
   0x8   :  { %8 = dma.hbm_to_smem %s355_s0, 16, %s254_s16, [#allocation2] }
   0x9   :  { %248 = dma.done.wait [#allocation2], 16 }
   0xa   :  { %249 = vsyncadd [#allocation2], 4294967280 }
   0xb   :  { %10 = sfence }
   0xc   :  { %11 = vsyncpa [#allocation5], 0 }
   0xd   :  { %12 = vsyncpa [#allocation6], 0  ;;  %s255_s19 = smov [#allocation4]   ;;  %s204_s23 = scalar_lea.hbm %s356_s1, 2048 }
   0xe   :  { %s18_s20 = sshll.u32 %s255_s19, 4  ;;  %p205_p3 = scmp.ne.s32.totalorder %s356_s1, %s204_s23  ;;  %s19_s20 = int_to_ptr.vmem [resolvable:$true] %s18_s20 }
   0xf   :  { %p208_p4 = scmp.lt.u32.totalorder %s204_s23, %s356_s1 }
  0x11   :  { %p210_p5 = pnand %p208_p4, %p205_p3 }
  0x13   :  { %213 = shalt.err (!%p210_p5)
}
  0x14   :  { %s214_s0 = scalar_lea.vmem %s19_s20, 2048  ;;  %p219_p7 = scmp.lt.s32.totalorder %s19_s20, %s19_s20 }
  0x15   :  { %p215_p6 = scmp.ne.s32.totalorder %s19_s20, %s214_s0  ;;  %p220_p8 = scmp.lt.s32.totalorder %s214_s0, %s214_s0 }
  0x17   :  { %p221_p9 = por %p220_p8, %p219_p7 }
  0x19   :  { %p222_p10 = pnand %p221_p9, %p215_p6 }
  0x1b   :  { %225 = shalt.err (!%p222_p10)
}
  0x1c   :  { %s256_s28 = smov 512   ;;  %s257_s29 = smov 32  }
  0x1d   :  { %24 = dma.hbm_to_vmem [thread:$0]  %s356_s1, 2048, %s19_s20, [#allocation5], %s256_s28, %s256_s28, %s257_s29  }
  0x1e   :  { %250 = dma.done.wait [#allocation5], 2048  }
  0x1f   :  { %251 = vsyncadd [#allocation5], 4294965248  ;;  %s32_s4 = sld [smem:[#allocation3]]  ;;  %s166_s5 = sld [smem:[#allocation3 + $0x1]]  ;;  %v298_v0 = vld [vmem:[#allocation4] sm:$0xff]  ;;  %v306_v8 = vld [vmem:[#allocation4 + $0x8] sm:$0xff] }
  0x20   :  { %s167_s6 = sld [smem:[#allocation3 + $0x2]]  ;;  %s168_s7 = sld [smem:[#allocation3 + $0x3]]  ;;  %v300_v2 = vld [vmem:[#allocation4 + $0x20] sm:$0xff]  ;;  %v40_v9 = vld [vmem:[#allocation4 + $0x28] sm:$0xff]  ;;  %v311_v18 = vld [vmem:[#allocation4 + $0x10] sm:$0xff] }
  0x21   :  { %v62_v4 = vld [vmem:[#allocation4 + $0x40] sm:$0xff]  ;;  %v63_v14 = vld [vmem:[#allocation4 + $0x48] sm:$0xff]  ;;  %v41_v21 = vld [vmem:[#allocation4 + $0x30] sm:$0xff]  ;;  %v57_v46 = vadd.f32 %v300_v2, %v298_v0  ;;  %v58_v50 = vadd.f32 %v40_v9, %v306_v8  ;;  %v53_v52 = vmax.f32 %v298_v0, %v300_v2  ;;  %v54_v56 = vmax.f32 %v306_v8, %v40_v9  ;;  %s258_s1 = smov [#allocation7]  }
  0x22   :  { %v304_v7 = vld [vmem:[#allocation4 + $0x60] sm:$0xff]  ;;  %v309_v17 = vld [vmem:[#allocation4 + $0x68] sm:$0xff]  ;;  %v64_v29 = vld [vmem:[#allocation4 + $0x50] sm:$0xff]  ;;  %v59_v60 = vadd.f32 %v41_v21, %v311_v18  ;;  %s157_s8 = sshll.u32 %s258_s1, 4  ;;  %s158_s8 = int_to_ptr.vmem [resolvable:$true] %s157_s8 }
  0x23   :  { %v316_v30 = vld [vmem:[#allocation4 + $0x70] sm:$0xff]  ;;  %v318_v31 = vld [vmem:[#allocation4 + $0x18] sm:$0xff]  ;;  %v80_v53 = vadd.f32 %v62_v4, %v57_v46  ;;  %v81_v57 = vadd.f32 %v63_v14, %v58_v50  ;;  %v76_v62 = vmax.f32 %v53_v52, %v62_v4  ;;  %s226_s9 = scalar_lea.vmem %s158_s8, 512  ;;  %p231_p12 = scmp.lt.s32.totalorder %s158_s8, %s158_s8 }
  0x24   :  { %v42_v36 = vld [vmem:[#allocation4 + $0x38] sm:$0xff]  ;;  %p227_p11 = scmp.ne.s32.totalorder %s158_s8, %s226_s9  ;;  %p232_p13 = scmp.lt.s32.totalorder %s226_s9, %s226_s9 }
  0x25   :  { %v33_v1 = vstv %s32_s4  ;;  %v44_v3 = vstv %s166_s5  ;;  %v65_v40 = vld [vmem:[#allocation4 + $0x58] sm:$0xff]  ;;  %v103_v63 = vadd.f32 %v304_v7, %v80_v53 }
  0x26   :  { %v34_v5 = vmul.f32 %v33_v1, %v298_v0  ;;  %v45_v6 = vmul.f32 %v44_v3, %v300_v2  ;;  %v67_v10 = vstv %s167_s6  ;;  %v90_v11 = vstv %s168_s7  ;;  %v322_v42 = vld [vmem:[#allocation4 + $0x78] sm:$0xff]  ;;  %p233_p0 = por %p232_p13, %p231_p12 }
  0x27   :  { %v35_v12 = vmul.f32 %v33_v1, %v306_v8  ;;  %v46_v13 = vmul.f32 %v44_v3, %v40_v9  ;;  %v68_v16 = vmul.f32 %v67_v10, %v62_v4  ;;  %v91_v19 = vmul.f32 %v90_v11, %v304_v7 }
  0x28   :  { %v49_v15 = vadd.f32 %v45_v6, %v34_v5  ;;  %v69_v23 = vmul.f32 %v67_v10, %v63_v14  ;;  %v92_v24 = vmul.f32 %v90_v11, %v309_v17  ;;  %v36_v25 = vmul.f32 %v33_v1, %v311_v18  ;;  %p234_p1 = pnand %p233_p0, %p227_p11 }
  0x29   :  { %v50_v20 = vadd.f32 %v46_v13, %v35_v12  ;;  %v47_v28 = vmul.f32 %v44_v3, %v41_v21  ;;  %v70_v35 = vmul.f32 %v67_v10, %v64_v29  ;;  %v93_v38 = vmul.f32 %v90_v11, %v316_v30 }
  0x2a   :  { %v72_v22 = vadd.f32 %v68_v16, %v49_v15  ;;  %v37_v39 = vmul.f32 %v33_v1, %v318_v31  ;;  %v48_v43 = vmul.f32 %v44_v3, %v42_v36  ;;  %v71_v45 = vmul.f32 %v67_v10, %v65_v40 }
  0x2b   :  { %v73_v27 = vadd.f32 %v69_v23, %v50_v20  ;;  %v51_v34 = vadd.f32 %v47_v28, %v36_v25  ;;  %v94_v48 = vmul.f32 %v90_v11, %v322_v42  ;;  %v77_v3 = vmax.f32 %v54_v56, %v63_v14 }
  0x2c   :  { %v95_v26 = vadd.f32 %v91_v19, %v72_v22  ;;  %v52_v47 = vadd.f32 %v48_v43, %v37_v39  ;;  %v104_v0 = vadd.f32 %v309_v17, %v81_v57  ;;  %v55_v2 = vmax.f32 %v311_v18, %v41_v21 }
  0x2d   :  { %v96_v33 = vadd.f32 %v92_v24, %v73_v27  ;;  %v74_v41 = vadd.f32 %v70_v35, %v51_v34  ;;  %v82_v5 = vadd.f32 %v64_v29, %v59_v60  ;;  %v99_v6 = vmax.f32 %v76_v62, %v304_v7 }
  0x2e   :  { %v169_v32 = vmul.f32 -1.442695, %v95_v26  ;;  %v75_v51 = vadd.f32 %v71_v45, %v52_v47  ;;  %v131_v8 = vmul.f32 0.25, %v103_v63  ;;  %v60_v9 = vadd.f32 %v42_v36, %v318_v31 }
  0x2f   :  { %v170_v37 = vmul.f32 -1.442695, %v96_v33  ;;  %v97_v44 = vadd.f32 %v93_v38, %v74_v41  ;;  %v100_v4 = vmax.f32 %v77_v3, %v309_v17  ;;  %v132_v11 = vmul.f32 0.25, %v104_v0 }
  0x30   :  { %178 = vpow2.f32 %v169_v32  ;;  %v98_v54 = vadd.f32 %v94_v48, %v75_v51  ;;  %v78_v13 = vmax.f32 %v55_v2, %v64_v29  ;;  %v105_v15 = vadd.f32 %v316_v30, %v82_v5 }
  0x31   :  { %180 = vpow2.f32 %v170_v37  ;;  %v171_v49 = vmul.f32 -1.442695, %v97_v44  ;;  %v135_v14 = vsub.f32 %v99_v6, %v131_v8  ;;  %v56_v16 = vmax.f32 %v318_v31, %v42_v36 }
  0x32   :  { %v172_v58 = vmul.f32 -1.442695, %v98_v54  ;;  %v83_v19 = vadd.f32 %v65_v40, %v60_v9  ;;  %v136_v20 = vsub.f32 %v100_v4, %v132_v11  ;;  %v101_v7 = vmax.f32 %v78_v13, %v316_v30 }
  0x33   :  { %182 = vpow2.f32 %v171_v49  ;;  %v133_v22 = vmul.f32 0.25, %v105_v15  ;;  %v79_v25 = vmax.f32 %v56_v16, %v65_v40 }
  0x34   :  { %184 = vpow2.f32 %v172_v58  ;;  %v106_v17 = vadd.f32 %v322_v42, %v83_v19 }
  0x35   :  { %v137_v29 = vsub.f32 %v101_v7, %v133_v22  ;;  %v102_v31 = vmax.f32 %v79_v25, %v322_v42 }
  0x36   :  { %v134_v33 = vmul.f32 0.25, %v106_v17 }
  0x38   :  { %v138_v30 = vsub.f32 %v102_v31, %v134_v33 }
  0x3a   :  { %v179_v55 = vpop.eup %178 }
  0x3b   :  { %v119_v59 = vadd.f32 1.0, %v179_v55  ;;  %v181_v61 = vpop.eup %180 }
  0x3c   :  { %v120_v1 = vadd.f32 1.0, %v181_v61 }
  0x3d   :  { %186 = vrcp.f32 %v119_v59  ;;  %v183_v10 = vpop.eup %182 }
  0x3e   :  { %188 = vrcp.f32 %v120_v1  ;;  %v121_v12 = vadd.f32 1.0, %v183_v10  ;;  %v185_v18 = vpop.eup %184 }
  0x3f   :  { %v122_v23 = vadd.f32 1.0, %v185_v18 }
  0x40   :  { %190 = vrcp.f32 %v121_v12 }
  0x41   :  { %192 = vrcp.f32 %v122_v23 }
  0x47   :  { %v187_v21 = vpop.eup %186 }
  0x48   :  { %v139_v24 = vmul.f32 %v187_v21, %v135_v14  ;;  %v189_v26 = vpop.eup %188 }
  0x49   :  { %v140_v28 = vmul.f32 %v189_v26, %v136_v20 }
  0x4a   :  { %v143_v27 = vadd.f32 %v139_v24, %v131_v8  ;;  %v191_v34 = vpop.eup %190 }
  0x4b   :  { %v144_v32 = vadd.f32 %v140_v28, %v132_v11  ;;  %v141_v35 = vmul.f32 %v191_v34, %v137_v29  ;;  %v193_v37 = vpop.eup %192 }
  0x4c   :  { %147 = vst [vmem:[#allocation7] sm:$0xff] %v143_v27  ;;  %v142_v38 = vmul.f32 %v193_v37, %v138_v30 }
  0x4d   :  { %148 = vst [vmem:[#allocation7 + $0x8] sm:$0xff] %v144_v32  ;;  %v145_v36 = vadd.f32 %v141_v35, %v133_v22 }
  0x4e   :  { %v146_v39 = vadd.f32 %v142_v38, %v134_v33 }
  0x4f   :  { %149 = vst [vmem:[#allocation7 + $0x10] sm:$0xff] %v145_v36 }
  0x50   :  { %150 = vst [vmem:[#allocation7 + $0x18] sm:$0xff] %v146_v39 }
  0x51   :  { %237 = shalt.err (!%p234_p1)
}
  0x52   :  { %s238_s12 = scalar_lea.hbm %s357_s2, 512 }
  0x53   :  { %p239_p2 = scmp.ne.s32.totalorder %s357_s2, %s238_s12  ;;  %p242_p3 = scmp.lt.u32.totalorder %s238_s12, %s357_s2 }
  0x55   :  { %p244_p4 = pnand %p242_p3, %p239_p2 }
  0x57   :  { %247 = shalt.err (!%p244_p4)
}
  0x58   :  { %160 = dma.vmem_to_hbm [thread:$0]  %s158_s8, 512, %s357_s2, [#allocation6]  }
  0x59   :  { %252 = dma.done.wait [#allocation6], 512  }
  0x5a   :  { %253 = vsyncadd [#allocation6], 4294966784 }
  0x5b   :  { %164 = vsyncpa [#allocation5], 1 }
  0x5c   :  { %165 = vsyncpa [#allocation6], 1 }

</bundles_post_ra>
